<compile_context>
chip_gen: v5e
topology: v5e:2x2
jax: 0.10.0
libtpu: 0.0.40
codegen_flags: <defaults>
</compile_context>

<pallas_src>
import functools

import jax
import jax.numpy as jnp
import numpy as np
from jax.experimental import pallas as pl
from jax.experimental.pallas import tpu as pltpu

_VMEM_LIMIT_BYTES = 32 * 1024 * 1024   # < 64 MiB physical on v7x; fine on v5e/v6e
_VMEM_TILE_BUDGET = 24 * 1024 * 1024   # headroom used when auto-sizing the tile


def _round_up(x, m):
    return ((x + m - 1) // m) * m


def _dot_ct(w, x):
    """(Cout, Cin) @ (Cin, T) -> (Cout, T), f32 accumulation on the MXU."""
    return jax.lax.dot_general(
        w, x, dimension_numbers=(((1,), (0,)), ((), ())),
        preferred_element_type=jnp.float32)


def _conv_taps(xc, xh, w, *, shifts, t_tile, need_window):
    """Dilated K-tap conv on one lane tile.

    xc: (Cin, t_tile) current block.  xh: (Cin, hb) halo-only block (the lanes
    immediately after the current block).  w: (K, Cout, Cin).
    Returns (y_f32 (Cout, t_tile), xw) where xw is the concatenated window
    (or xc when no window was required)."""
    y = _dot_ct(w[0], xc)                        # tap 0: aligned, no copy
    xw = xc
    if need_window or len(shifts) > 1:
        xw = jnp.concatenate([xc, xh], axis=1)   # lane-aligned concat (tt + hb)
        for k in range(1, len(shifts)):
            s = shifts[k]
            y = y + _dot_ct(w[k], xw[:, s:s + t_tile])
    return y, xw


def _stats_kernel(xc_ref, xh_ref, w_ref, sum_ref, sq_ref, *,
                  shifts, t_tile, t_out):
    """Pass 1: per-(batch, channel) sum / sum-of-squares of the conv1 output."""
    i = pl.program_id(1)

    @pl.when(i == 0)
    def _init():
        sum_ref[...] = jnp.zeros_like(sum_ref)
        sq_ref[...] = jnp.zeros_like(sq_ref)

    y, _ = _conv_taps(xc_ref[...], xh_ref[...], w_ref[...],
                      shifts=shifts, t_tile=t_tile, need_window=False)

    # Mask conv outputs that fall in the ragged tail of the last tile so the
    # batch statistics stay exactly global over (B, Tout).  Single mask.
    t_idx = jax.lax.broadcasted_iota(jnp.int32, (1, t_tile), 1)
    ym = jnp.where(t_idx < (t_out - i * t_tile), y, 0.0)
    sum_ref[...] += jnp.sum(ym, axis=1, keepdims=True)
    sq_ref[...] += jnp.sum(ym * ym, axis=1, keepdims=True)


def _apply_kernel(xc_ref, xh_ref, w_ref, wres_ref, scale_ref, shift_ref,
                  alpha_ref, o_ref, *, shifts, t_tile, crop_start):
    """Pass 2: conv1 (recomputed) -> folded BN -> PReLU -> + cropped residual."""
    y, xw = _conv_taps(xc_ref[...], xh_ref[...], w_ref[...],
                       shifts=shifts, t_tile=t_tile,
                       need_window=crop_start > 0)

    # BatchNorm folded into per-channel scale/shift, then PReLU (VPU epilogue).
    y = y * scale_ref[...] + shift_ref[...]
    y = jnp.where(y > 0, y, alpha_ref[...] * y)

    # Grouped 1x1 residual conv on the center-cropped window only.
    res = _dot_ct(wres_ref[...], xw[:, crop_start:crop_start + t_tile])

    o_ref[...] = (y + res).astype(o_ref.dtype)


def tcn_block_forward(x_nct, w1, wres_vec, gamma, beta, alpha, *,
                      dilation=1, eps=1e-5, time_tile=65536,
                      compute_dtype=None):
    """TCNBlock forward.

    x_nct    : (B, Cin, T)   PyTorch NCL layout
    w1       : (Cout, Cin, K) torch Conv1d weight
    wres_vec : (Cout,)        grouped 1x1 res-conv weight (torch (Cout,1,1) squeezed)
    gamma/beta/alpha : (Cout,) BatchNorm affine params and PReLU slopes
    Returns (B, Cout, Tout) float32, Tout = T - dilation*(K-1).
    """
    x = jnp.asarray(x_nct)
    B, Cin, T = x.shape
    w1 = jnp.asarray(w1)
    Cout, Cin_w, K = w1.shape
    assert Cin_w == Cin
    assert Cout % Cin == 0, "res conv uses groups=in_ch -> in_ch must divide out_ch"

    halo = dilation * (K - 1)
    Tout = T - halo
    assert Tout > 0
    crop_start = halo // 2

    # Compute dtype: by default use x's dtype (no forced HBM cast copy).
    cdt = jnp.dtype(x.dtype if compute_dtype is None else compute_dtype)
    if x.dtype != cdt:
        x = x.astype(cdt)             # explicit opt-in (one extra copy of x)

    # Halo-only block width: must be a 128 multiple and must divide tt so the
    # halo index_map lands on block boundaries.
    hb = max(128, _round_up(halo, 128))

    # Lane-dense time tile: as large as the problem / VMEM budget allows so the
    # ~0.35us per-grid-step overhead is amortized (especially on v7x).
    itemsize = cdt.itemsize
    per_lane = (2 * Cin * itemsize        # double-buffered current input block
                + 2 * Cout * 4            # double-buffered f32 output block
                + Cin * itemsize          # in-kernel concat window
                + 2 * Cout * 4)           # f32 temporaries (y, res / masked y)
    cap = max(hb, (_VMEM_TILE_BUDGET // per_lane) // hb * hb)
    tt = _round_up(min(time_tile, max(Tout, 1)), hb)
    tt = max(hb, min(tt, cap))

    nT = -(-Tout // tt)                   # ceil
    max_hidx = (T - 1) // hb              # last at-least-partially-in-bounds block

    f32 = jnp.float32
    w_taps = jnp.transpose(w1, (2, 0, 1)).astype(cdt)     # (K, Cout, Cin)

    # Densify the grouped 1x1 residual conv: out channel o reads in channel o//g.
    g = Cout // Cin
    wres_dense = (jnp.zeros((Cout, Cin), cdt)
                  .at[jnp.arange(Cout), jnp.arange(Cout) // g]
                  .set(jnp.asarray(wres_vec).astype(cdt)))

    shifts = tuple(k * dilation for k in range(K))

    # Current tile + halo-only tile right after it.  The halo index is clamped
    # so it never points at a fully out-of-bounds block; whenever the clamp
    # kicks in, no valid output reads those lanes (they are masked / discarded).
    x_cur_spec = pl.BlockSpec((None, Cin, tt), lambda b, i: (b, 0, i))
    x_halo_spec = pl.BlockSpec(
        (None, Cin, hb),
        lambda b, i: (b, 0, jnp.minimum((i + 1) * (tt // hb), max_hidx)))
    w_spec = pl.BlockSpec((K, Cout, Cin), lambda b, i: (0, 0, 0))
    wres_spec = pl.BlockSpec((Cout, Cin), lambda b, i: (0, 0))
    vec_spec = pl.BlockSpec((Cout, 1), lambda b, i: (0, 0))
    stats_spec = pl.BlockSpec((None, Cout, 1), lambda b, i: (b, 0, 0))

    # ---- pass 1: per-(batch, channel) sum / sum-of-squares of conv1 output ----
    # Per-batch accumulator blocks keep the batch grid axis "parallel" (v7x
    # megacore); the tiny (B, Cout, 1) partials are reduced over B on the host
    # side of the call.
    ch_sum, ch_sq = pl.pallas_call(
        functools.partial(_stats_kernel, shifts=shifts, t_tile=tt, t_out=Tout),
        grid=(B, nT),
        in_specs=[x_cur_spec, x_halo_spec, w_spec],
        out_specs=(stats_spec, stats_spec),
        out_shape=(jax.ShapeDtypeStruct((B, Cout, 1), f32),
                   jax.ShapeDtypeStruct((B, Cout, 1), f32)),
        compiler_params=pltpu.CompilerParams(
            dimension_semantics=("parallel", "arbitrary"),
            vmem_limit_bytes=_VMEM_LIMIT_BYTES),
    )(x, x, w_taps)

    # Fold BatchNorm (biased batch stats, training-mode forward) into scale/shift.
    n = float(B * Tout)
    mean = jnp.sum(ch_sum, axis=0) / n                         # (Cout, 1)
    var = jnp.maximum(jnp.sum(ch_sq, axis=0) / n - mean * mean, 0.0)
    inv_std = jax.lax.rsqrt(var + eps)
    scale = jnp.asarray(gamma, f32).reshape(Cout, 1) * inv_std
    shift = jnp.asarray(beta, f32).reshape(Cout, 1) - mean * scale
    alpha_c = jnp.asarray(alpha, f32).reshape(Cout, 1)

    # ---- pass 2: conv (recomputed) -> BN -> PReLU -> + cropped residual -------
    out = pl.pallas_call(
        functools.partial(_apply_kernel, shifts=shifts, t_tile=tt,
                          crop_start=crop_start),
        grid=(B, nT),
        in_specs=[x_cur_spec, x_halo_spec, w_spec, wres_spec,
                  vec_spec, vec_spec, vec_spec],
        out_specs=pl.BlockSpec((None, Cout, tt), lambda b, i: (b, 0, i)),
        out_shape=jax.ShapeDtypeStruct((B, Cout, Tout), f32),
        compiler_params=pltpu.CompilerParams(
            dimension_semantics=("parallel", "parallel"),
            vmem_limit_bytes=_VMEM_LIMIT_BYTES),
    )(x, x, w_taps, wres_dense, scale, shift, alpha_c)

    return out


def _ref(x, w1, wres, gamma, beta, alpha, dilation):
    """Pure numpy reference in PyTorch NCL layout (float64 internally)."""
    x = np.asarray(x, np.float64)
    w1 = np.asarray(w1, np.float64)
    B, Cin, T = x.shape
    Cout, _, K = w1.shape
    Tout = T - dilation * (K - 1)

    y = np.zeros((B, Cout, Tout), np.float64)
    for k in range(K):
        xk = x[:, :, k * dilation:k * dilation + Tout]
        y += np.einsum('oi,bit->bot', w1[:, :, k], xk)

    mean = y.mean(axis=(0, 2), keepdims=True)
    var = y.var(axis=(0, 2), keepdims=True)           # biased, like torch BN forward
    y = (y - mean) / np.sqrt(var + 1e-5)
    y = y * np.asarray(gamma, np.float64)[None, :, None] \
        + np.asarray(beta, np.float64)[None, :, None]
    y = np.where(y > 0, y, np.asarray(alpha, np.float64)[None, :, None] * y)

    g = Cout // Cin
    xres = np.asarray(wres, np.float64)[None, :, None] * x[:, np.arange(Cout) // g, :]
    start = (T - Tout) // 2
    return (y + xres[:, :, start:start + Tout]).astype(np.float32)


def _run_case(key, B, Cin, Cout, T, K, dilation, time_tile=65536):
    ks = jax.random.split(key, 6)
    x = jax.random.normal(ks[0], (B, Cin, T), jnp.float32)
    w1 = 0.3 * jax.random.normal(ks[1], (Cout, Cin, K), jnp.float32)
    wres = 0.3 * jax.random.normal(ks[2], (Cout,), jnp.float32)
    gamma = 1.0 + 0.1 * jax.random.normal(ks[3], (Cout,), jnp.float32)
    beta = 0.1 * jax.random.normal(ks[4], (Cout,), jnp.float32)
    alpha = 0.25 + 0.05 * jax.random.normal(ks[5], (Cout,), jnp.float32)

    out = tcn_block_forward(x, w1, wres, gamma, beta, alpha,
                            dilation=dilation, time_tile=time_tile)
    out = jax.block_until_ready(out)

    ref = _ref(np.asarray(x), np.asarray(w1), np.asarray(wres),
               np.asarray(gamma), np.asarray(beta), np.asarray(alpha), dilation)
    np.testing.assert_allclose(np.asarray(out), ref, rtol=2e-4, atol=2e-4)


if __name__ == "__main__":
    key = jax.random.PRNGKey(0)
    k1, k2, k3 = jax.random.split(key, 3)
    # Small module-default config: in_ch=4, out_ch=8, kernel_size=3, dilation=1.
    _run_case(k1, B=2, Cin=4, Cout=8, T=16, K=3, dilation=1)
    # Multi-tile dilated config exercising the halo block, clamped halo index,
    # the stats mask and a partial last tile.
    _run_case(k2, B=2, Cin=4, Cout=8, T=300, K=3, dilation=4, time_tile=128)
    # Longer sequence, several time tiles with cross-tile stats accumulation.
    _run_case(k3, B=2, Cin=4, Cout=8, T=5000, K=3, dilation=2, time_tile=1024)
    print("KERNEL_OK")
</pallas_src>

<mosaic_0001>
module attributes {stable_mosaic.version = 11 : i64} {
  func.func @_stats_kernel(%arg0: i32, %arg1: i32, %arg2: memref<1x4x128xf32, #tpu.memory_space<vmem>>, %arg3: memref<1x4x128xf32, #tpu.memory_space<vmem>>, %arg4: memref<3x8x4xf32, #tpu.memory_space<vmem>>, %arg5: memref<1x8x1xf32, #tpu.memory_space<vmem>>, %arg6: memref<1x8x1xf32, #tpu.memory_space<vmem>>) attributes {dimension_semantics = [#tpu.dimension_semantics<parallel>, #tpu.dimension_semantics<arbitrary>], iteration_bounds = array<i64: 2, 1>, scalar_prefetch = 0 : i64, scratch_operands = 0 : i64, tpu.core_type = #tpu.core_type<tc>, window_params = [{transform_indices = @transform_0, window_bounds = array<i64: 1, 4, 128>}, {transform_indices = @transform_1, window_bounds = array<i64: 1, 4, 128>}, {pipeline_mode = #tpu.pipeline_mode<synchronous>, transform_indices = @transform_2, window_bounds = array<i64: 3, 8, 4>}, {transform_indices = @transform_3, window_bounds = array<i64: 1, 8, 1>}, {transform_indices = @transform_4, window_bounds = array<i64: 1, 8, 1>}]} {
    %c0_i32 = arith.constant 0 : i32
    %0 = arith.cmpi eq, %arg1, %c0_i32 : i32
    %1 = arith.extui %0 : i1 to i32
    %c0_i32_0 = arith.constant 0 : i32
    %2 = arith.cmpi ne, %1, %c0_i32_0 : i32
    scf.if %2 {
      %cst_26 = arith.constant 0.000000e+00 : f32
      %48 = vector.broadcast %cst_26 : f32 to vector<8x1xf32>
      %c0_27 = arith.constant 0 : index
      %c0_28 = arith.constant 0 : index
      %c0_29 = arith.constant 0 : index
      %49 = vector.load %arg5[%c0_27, %c0_28, %c0_29] : memref<1x8x1xf32, #tpu.memory_space<vmem>>, vector<1x8x1xf32>
      %50 = vector.shape_cast %49 : vector<1x8x1xf32> to vector<8x1xf32>
      %51 = vector.shape_cast %48 : vector<8x1xf32> to vector<1x8x1xf32>
      tpu.vector_store %arg5[%c0_27, %c0_28, %c0_29], %51 {strides = array<i32>} : memref<1x8x1xf32, #tpu.memory_space<vmem>>, vector<1x8x1xf32>,
      %cst_30 = arith.constant 0.000000e+00 : f32
      %52 = vector.broadcast %cst_30 : f32 to vector<8x1xf32>
      %c0_31 = arith.constant 0 : index
      %c0_32 = arith.constant 0 : index
      %c0_33 = arith.constant 0 : index
      %53 = vector.load %arg6[%c0_31, %c0_32, %c0_33] : memref<1x8x1xf32, #tpu.memory_space<vmem>>, vector<1x8x1xf32>
      %54 = vector.shape_cast %53 : vector<1x8x1xf32> to vector<8x1xf32>
      %55 = vector.shape_cast %52 : vector<8x1xf32> to vector<1x8x1xf32>
      tpu.vector_store %arg6[%c0_31, %c0_32, %c0_33], %55 {strides = array<i32>} : memref<1x8x1xf32, #tpu.memory_space<vmem>>, vector<1x8x1xf32>,
    } else {
    }
    %c0 = arith.constant 0 : index
    %c0_1 = arith.constant 0 : index
    %c0_2 = arith.constant 0 : index
    %3 = vector.load %arg2[%c0, %c0_1, %c0_2] : memref<1x4x128xf32, #tpu.memory_space<vmem>>, vector<1x4x128xf32>
    %4 = vector.shape_cast %3 : vector<1x4x128xf32> to vector<4x128xf32>
    %c0_3 = arith.constant 0 : index
    %c0_4 = arith.constant 0 : index
    %c0_5 = arith.constant 0 : index
    %5 = vector.load %arg3[%c0_3, %c0_4, %c0_5] : memref<1x4x128xf32, #tpu.memory_space<vmem>>, vector<1x4x128xf32>
    %6 = vector.shape_cast %5 : vector<1x4x128xf32> to vector<4x128xf32>
    %c0_6 = arith.constant 0 : index
    %c0_7 = arith.constant 0 : index
    %c0_8 = arith.constant 0 : index
    %7 = vector.load %arg4[%c0_6, %c0_7, %c0_8] : memref<3x8x4xf32, #tpu.memory_space<vmem>>, vector<3x8x4xf32>
    %8 = vector.extract_strided_slice %7 {offsets = [0, 0, 0], sizes = [1, 8, 4], strides = [1, 1, 1]} : vector<3x8x4xf32> to vector<1x8x4xf32>
    %9 = vector.shape_cast %8 : vector<1x8x4xf32> to vector<8x4xf32>
    %cst = arith.constant dense<0.000000e+00> : vector<8x128xf32>
    %10 = tpu.matmul %9, %4, %cst {dimension_numbers = #tpu.dot_dimension_numbers<[1], [0], [0], [1], [0, 0, 1, 1], [], []>} : vector<8x4xf32>, vector<4x128xf32>, vector<8x128xf32> -> vector<8x128xf32>
    %11 = tpu.concatenate %4, %6 in 1 : vector<4x128xf32>, vector<4x128xf32> -> vector<4x256xf32>
    %12 = vector.extract_strided_slice %7 {offsets = [1, 0, 0], sizes = [1, 8, 4], strides = [1, 1, 1]} : vector<3x8x4xf32> to vector<1x8x4xf32>
    %13 = vector.shape_cast %12 : vector<1x8x4xf32> to vector<8x4xf32>
    %14 = vector.extract_strided_slice %11 {offsets = [0, 1], sizes = [4, 128], strides = [1, 1]} : vector<4x256xf32> to vector<4x128xf32>
    %cst_9 = arith.constant dense<0.000000e+00> : vector<8x128xf32>
    %15 = tpu.matmul %13, %14, %cst_9 {dimension_numbers = #tpu.dot_dimension_numbers<[1], [0], [0], [1], [0, 0, 1, 1], [], []>} : vector<8x4xf32>, vector<4x128xf32>, vector<8x128xf32> -> vector<8x128xf32>
    %16 = arith.addf %10, %15 : vector<8x128xf32>
    %17 = vector.extract_strided_slice %7 {offsets = [2, 0, 0], sizes = [1, 8, 4], strides = [1, 1, 1]} : vector<3x8x4xf32> to vector<1x8x4xf32>
    %18 = vector.shape_cast %17 : vector<1x8x4xf32> to vector<8x4xf32>
    %19 = vector.extract_strided_slice %11 {offsets = [0, 2], sizes = [4, 128], strides = [1, 1]} : vector<4x256xf32> to vector<4x128xf32>
    %cst_10 = arith.constant dense<0.000000e+00> : vector<8x128xf32>
    %20 = tpu.matmul %18, %19, %cst_10 {dimension_numbers = #tpu.dot_dimension_numbers<[1], [0], [0], [1], [0, 0, 1, 1], [], []>} : vector<8x4xf32>, vector<4x128xf32>, vector<8x128xf32> -> vector<8x128xf32>
    %21 = arith.addf %16, %20 : vector<8x128xf32>
    %22 = tpu.iota {dimensions = array<i32: 1>} : vector<1x128xi32>
    %c128_i32 = arith.constant 128 : i32
    %23 = arith.muli %arg1, %c128_i32 : i32
    %c14_i32 = arith.constant 14 : i32
    %24 = arith.subi %c14_i32, %23 : i32
    %25 = vector.broadcast %24 : i32 to vector<1x128xi32>
    %26 = arith.cmpi slt, %22, %25 : vector<1x128xi32>
    %cst_11 = arith.constant 0.000000e+00 : f32
    %27 = vector.shape_cast %26 : vector<1x128xi1> to vector<1x128xi1>
    %28 = vector.broadcast %27 : vector<1x128xi1> to vector<8x128xi1>
    %29 = vector.broadcast %cst_11 : f32 to vector<8x128xf32>
    %30 = arith.select %28, %21, %29 : vector<8x128xi1>, vector<8x128xf32>
    %c0_12 = arith.constant 0 : index
    %c0_13 = arith.constant 0 : index
    %c0_14 = arith.constant 0 : index
    %31 = vector.load %arg5[%c0_12, %c0_13, %c0_14] : memref<1x8x1xf32, #tpu.memory_space<vmem>>, vector<1x8x1xf32>
    %32 = vector.shape_cast %31 : vector<1x8x1xf32> to vector<8x1xf32>
    %cst_15 = arith.constant dense<0.000000e+00> : vector<8xf32>
    %33 = vector.multi_reduction <add>, %30, %cst_15 [1] : vector<8x128xf32> to vector<8xf32>
    %34 = vector.shape_cast %33 : vector<8xf32> to vector<8x1xf32>
    %35 = arith.addf %32, %34 : vector<8x1xf32>
    %c0_16 = arith.constant 0 : index
    %c0_17 = arith.constant 0 : index
    %c0_18 = arith.constant 0 : index
    %36 = vector.load %arg5[%c0_16, %c0_17, %c0_18] : memref<1x8x1xf32, #tpu.memory_space<vmem>>, vector<1x8x1xf32>
    %37 = vector.shape_cast %36 : vector<1x8x1xf32> to vector<8x1xf32>
    %38 = vector.shape_cast %35 : vector<8x1xf32> to vector<1x8x1xf32>
    tpu.vector_store %arg5[%c0_16, %c0_17, %c0_18], %38 {strides = array<i32>} : memref<1x8x1xf32, #tpu.memory_space<vmem>>, vector<1x8x1xf32>,
    %c0_19 = arith.constant 0 : index
    %c0_20 = arith.constant 0 : index
    %c0_21 = arith.constant 0 : index
    %39 = vector.load %arg6[%c0_19, %c0_20, %c0_21] : memref<1x8x1xf32, #tpu.memory_space<vmem>>, vector<1x8x1xf32>
    %40 = vector.shape_cast %39 : vector<1x8x1xf32> to vector<8x1xf32>
    %41 = arith.mulf %30, %30 : vector<8x128xf32>
    %cst_22 = arith.constant dense<0.000000e+00> : vector<8xf32>
    %42 = vector.multi_reduction <add>, %41, %cst_22 [1] : vector<8x128xf32> to vector<8xf32>
    %43 = vector.shape_cast %42 : vector<8xf32> to vector<8x1xf32>
    %44 = arith.addf %40, %43 : vector<8x1xf32>
    %c0_23 = arith.constant 0 : index
    %c0_24 = arith.constant 0 : index
    %c0_25 = arith.constant 0 : index
    %45 = vector.load %arg6[%c0_23, %c0_24, %c0_25] : memref<1x8x1xf32, #tpu.memory_space<vmem>>, vector<1x8x1xf32>
    %46 = vector.shape_cast %45 : vector<1x8x1xf32> to vector<8x1xf32>
    %47 = vector.shape_cast %44 : vector<8x1xf32> to vector<1x8x1xf32>
    tpu.vector_store %arg6[%c0_23, %c0_24, %c0_25], %47 {strides = array<i32>} : memref<1x8x1xf32, #tpu.memory_space<vmem>>, vector<1x8x1xf32>,
    return
  }
  func.func @transform_0(%arg0: i32, %arg1: i32) -> (i32, i32, i32) {
    %c0_i32 = arith.constant 0 : i32
    %c0_i32_0 = arith.constant 0 : i32
    return %arg0, %c0_i32, %arg1 : i32, i32, i32
  }
  func.func @transform_1(%arg0: i32, %arg1: i32) -> (i32, i32, i32) {
    %c1_i32 = arith.constant 1 : i32
    %0 = arith.addi %arg1, %c1_i32 : i32
    %c1_i32_0 = arith.constant 1 : i32
    %1 = arith.muli %0, %c1_i32_0 : i32
    %c0_i32 = arith.constant 0 : i32
    %2 = arith.minsi %1, %c0_i32 : i32
    %c0_i32_1 = arith.constant 0 : i32
    %c0_i32_2 = arith.constant 0 : i32
    return %arg0, %c0_i32_1, %2 : i32, i32, i32
  }
  func.func @transform_2(%arg0: i32, %arg1: i32) -> (i32, i32, i32) {
    %c0_i32 = arith.constant 0 : i32
    %c0_i32_0 = arith.constant 0 : i32
    %c0_i32_1 = arith.constant 0 : i32
    %c0_i32_2 = arith.constant 0 : i32
    return %c0_i32, %c0_i32_0, %c0_i32_1 : i32, i32, i32
  }
  func.func @transform_3(%arg0: i32, %arg1: i32) -> (i32, i32, i32) {
    %c0_i32 = arith.constant 0 : i32
    %c0_i32_0 = arith.constant 0 : i32
    %c0_i32_1 = arith.constant 0 : i32
    return %arg0, %c0_i32, %c0_i32_0 : i32, i32, i32
  }
  func.func @transform_4(%arg0: i32, %arg1: i32) -> (i32, i32, i32) {
    %c0_i32 = arith.constant 0 : i32
    %c0_i32_0 = arith.constant 0 : i32
    %c0_i32_1 = arith.constant 0 : i32
    return %arg0, %c0_i32, %c0_i32_0 : i32, i32, i32
  }
}

</mosaic_0001>

<bundles_post_ra>
// kernel: tpu_custom_call.1
= control target key start
LH: loop header
LB: loop body
LE: loop exit
PB: predicated region body
PF: predicated region fallthrough
CT: control target
= control target key end

     0   :  { %s607_s15 = smov 0   ;;  %s609_s16 = smov 0   ;;  %s669_s0 = inlined_call_operand.vmem [shape: f32[2,4,16], index: 0, kind: input, shape index: {}]   ;;  %s670_s1 = inlined_call_operand.vmem [shape: f32[2,4,16], index: 1, kind: input, shape index: {}]   ;;  %s671_s2 = inlined_call_operand.vmem [shape: f32[3,8,4], index: 2, kind: input, shape index: {}]   ;;  %s672_s3 = inlined_call_operand.vmem [shape: f32[2,8,1], index: 3, kind: output, shape index: {0}]   ;;  %s673_s4 = inlined_call_operand.vmem [shape: f32[2,8,1], index: 4, kind: output, shape index: {1}]  }
   0x1   :  { %s611_s17 = smov 0  }
   0x2 LB: > { %s27_s18 = sadd.s32 1, %s573_s16  ;;  %p515_p0 = scmp.ge.s32.totalorder %s577_s17, 1  ;;  %s577_s17 = sphi %s611_s17, %s15_s17   ;;  %s573_s16 = sphi %s609_s16, %s675_s16   ;;  %s569_s15 = sphi %s607_s15, %s674_s15  }
   0x3   : > { %p29_p1 = scmp.ge.s32.totalorder %s27_s18, 2  ;;  %p207_p2 = scmp.lt.s32.totalorder %s577_s17, 3 }
   0x5   : > { %s677_s18 = smov (%p29_p1, %s27_s18), 0  ;;  %p208_p3 = pnand %p515_p0, %p207_p2 }
   0x6   : > { %p248_p4 = scmp.lt.s32.totalorder (!%p208_p3), %s569_s15, 1  ;;  %s579_s23 = smov (!%p208_p3), 127  }
   0x7   : > { %211 = sbr.rel (%p208_p3) target bundleno = 403 (0x193), region = 32  ;;  %s580_s24 = smov (!%p208_p3), 126  }
   0xc   : > { %s679_s15 = smov (!%p248_p4, %s569_s15), 1  ;;  %vm300_vm0 = vcmask 1043456   ;;  %vm296_vm1 = vcmask 31744   ;;  %v285_v2 = vld [vmem:[%s671_s2] sm:$0xff]  ;;  %vm294_vm2 = vcmask 1039360   ;;  %vm352_vm3 = vcmask 1031168  }
   0xd   : > { %s516_s19 = sshll.u32 %s679_s15, 2  ;;  %v287_v7 = vld [vmem:[%s671_s2 + $0x10] sm:$0xff]  ;;  %v286_v8 = vld [vmem:[%s671_s2 + $0x8] sm:$0xff]  ;;  %s518_s8 = sshll.u32 %s679_s15, 3  ;;  %vm280_vm4 = vcmask 7168   ;;  %v581_v11 = vmov 0.0   ;;  %v380_v12 = vlaneseq }
   0xe   : > { %s254_s22 = scalar_lea.vmem %s669_s0, %s516_s19  ;;  %s264_s27 = scalar_lea.vmem %s670_s1, %s516_s19 }
   0xf   : > { %v283_v0 = vld [vmem:[%s254_s22] sm:$0xf]  ;;  %s271_s11 = scalar_lea.vmem %s672_s3, %s518_s8  ;;  %s275_s14 = scalar_lea.vmem %s673_s4, %s518_s8  ;;  %v381_v15 = vand.u32 127, %v380_v12 }
  0x10   : > { %290 = vrot.lane.b32.xlu1 %v283_v0, %s579_s23  ;;  %348 = vrot.lane.b32.xlu0 %v283_v0, %s580_s24  ;;  %v284_v1 = vld [vmem:[%s264_s27] sm:$0xf]  ;;  %281 = vst.msk [vmem:[%s271_s11] sm:$0xff] %vm280_vm4, %v581_v11 }
  0x11   : > { %522 = vmatpush.msk.msra.mxu1 %vm300_vm0, %v283_v0  ;;  %282 = vst.msk [vmem:[%s275_s14] sm:$0xff] %vm280_vm4, %v581_v11  ;;  %vm385_vm5 = vcmp.lt.s32.totalorder %v381_v15, 14 }
  0x12   : > { %523 = vmatmul.msk.f32.vlgmr.msra.gmra.mxu1 %vm296_vm1, %v285_v2 }
  0x17   : > { %v389_v21 = vld [vmem:[%s271_s11] sm:$0xff] }
  0x18   : > { %292 = vrot.lane.b32.xlu1 %v284_v1, %s579_s23  ;;  %350 = vrot.lane.b32.xlu0 %v284_v1, %s580_s24  ;;  %v395_v24 = vld [vmem:[%s275_s14] sm:$0xff] }
  0x82   : > { %v291_v3 = vpop.permute.xlu1 %290  ;;  %v349_v4 = vpop.permute.xlu0 %348 }
  0x8a   : > { %v293_v5 = vpop.permute.xlu1 %292  ;;  %v351_v6 = vpop.permute.xlu0 %350 }
  0x8b   : > { %v295_v9 = vsel %vm294_vm2, %v291_v3, %v293_v5  ;;  %v353_v10 = vsel %vm352_vm3, %v349_v4, %v351_v6 }
  0x8c   : > { %520 = vmatpush.msk.msra.mxu0 %vm300_vm0, %v295_v9  ;;  %524 = vmatpush.msk.msra.mxu2 %vm300_vm0, %v353_v10 }
  0x8d   : > { %525 = vmatmul.msk.f32.vlgmr.msra.gmra.mxu2 %vm296_vm1, %v287_v7  ;;  %521 = vmatmul.msk.f32.vlgmr.msra.gmra.mxu0 %vm296_vm1, %v286_v8 }
  0x8f   : > { %v345_v14 = vpop.f32.mrf.mxu1 }
 0x10a   : > { %v320_v13 = vpop.f32.mrf.mxu0 }
 0x10b   : > { %v346_v16 = vadd.f32 %v345_v14, %v320_v13 }
 0x110   : > { %v376_v17 = vpop.f32.mrf.mxu2 }
 0x111   : > { %v379_v18 = vadd.f32 %v376_v17, %v346_v16 }
 0x113   : > { %v388_v19 = vsel %vm385_vm5, %v379_v18, 0.0 }
 0x114   : > { %390 = vadd.xlane.f32.xlu2 %v388_v19  ;;  %v396_v20 = vmul.f32 %v388_v19, %v388_v19 }
 0x11c   : > { %397 = vadd.xlane.f32.xlu2 %v396_v20 }
 0x187   : > { %v391_v22 = vpop.xlane.xlu2 %390 }
 0x188   : > { %v392_v23 = vadd.f32 %v391_v22, %v389_v21 }
 0x18a   : > { %394 = vst.msk [vmem:[%s271_s11] sm:$0xff] %vm280_vm4, %v392_v23 }
 0x18f   : > { %v398_v25 = vpop.xlane.xlu2 %397 }
 0x190   : > { %v399_v26 = vadd.f32 %v398_v25, %v395_v24 }
 0x192   : > { %400 = vst.msk [vmem:[%s275_s14] sm:$0xff] %vm280_vm4, %v399_v26 }
 0x193 PF: > { %s15_s17 = sadd.s32 1, %s577_s17   ;;  %s674_s15 = smov %s573_s16 }
 0x194   : > { %p12_p5 = scmp.ge.s32.totalorder %s15_s17, 4   ;;  %s675_s16 = smov %s677_s18 }
 0x196   :  { %14 = sbr.rel (!%p12_p5) target bundleno = 2 (0x2), region = 81 }

</bundles_post_ra>
